<compile_context>
chip_gen: v5e
topology: v5e:2x2
jax: 0.10.0
libtpu: 0.0.40
codegen_flags: <defaults>
</compile_context>

<pallas_src>
import math

import jax
import jax.numpy as jnp
from jax.experimental import pallas as pl
from jax.experimental.pallas import tpu as pltpu


def _round_up(x, m):
    return ((x + m - 1) // m) * m


def _erf_f32(x):
    # Abramowitz & Stegun 7.1.26 polynomial erf (max abs error ~1.5e-7).
    # Uses only VPU ops + one EUP exp, so it lowers cleanly in Mosaic and
    # matches PyTorch's exact (erf-based) nn.GELU to well below bf16 noise.
    a1, a2, a3, a4, a5 = (0.254829592, -0.284496736, 1.421413741,
                          -1.453152027, 1.061405429)
    p = 0.3275911
    sign = jnp.where(x < 0.0, -1.0, 1.0)
    ax = jnp.abs(x)
    t = 1.0 / (1.0 + p * ax)
    poly = t * (a1 + t * (a2 + t * (a3 + t * (a4 + t * a5))))
    return sign * (1.0 - poly * jnp.exp(-(ax * ax)))


def _gelu_exact(x):
    return 0.5 * x * (1.0 + _erf_f32(x * 0.7071067811865476))


def _mlp_kernel(x_ref, w1_ref, b1_ref, w2_ref, b2_ref, o_ref):
    # x_ref: (tm, D_in) bf16   w1_ref: (D_in, H) bf16   b1_ref: (1, H) f32
    # w2_ref: (H, D_out) bf16  b2_ref: (1, D_out) f32   o_ref: (tm, D_out)
    h = jnp.dot(x_ref[...], w1_ref[...], preferred_element_type=jnp.float32)
    h = _gelu_exact(h + b1_ref[...])
    # nn.Dropout(p=0.0) / eval-mode dropout is the identity -> no-op here.
    # TODO(synk): training-mode dropout with p>0 would use pltpu.prng_seed +
    # pltpu.stateful_bernoulli; not part of this forward's semantics.
    h = h.astype(w2_ref.dtype)  # back to bf16 for the second MXU pass
    o = jnp.dot(h, w2_ref[...], preferred_element_type=jnp.float32)
    o_ref[...] = (o + b2_ref[...]).astype(o_ref.dtype)


def mlp_forward(x, w1, b1, w2, b2, *, tm=None, compute_dtype=jnp.bfloat16,
                vmem_limit_bytes=48 * 1024 * 1024):
    """Fused MLP forward: gelu(x @ w1 + b1) @ w2 + b2 (dropout = identity).

    x : [..., D_in]
    w1: [D_in, H]    (PyTorch fc1.weight.T — relayout done once at init)
    b1: [H]
    w2: [H, D_out]   (PyTorch fc2.weight.T)
    b2: [D_out]
    Returns [..., D_out] in x.dtype.
    """
    orig_dtype = x.dtype
    lead_shape = x.shape[:-1]
    d_in = x.shape[-1]
    h_dim = w1.shape[1]
    d_out = w2.shape[1]
    assert w1.shape[0] == d_in and w2.shape[0] == h_dim
    assert b1.shape == (h_dim,) and b2.shape == (d_out,)

    x2 = x.reshape(-1, d_in).astype(compute_dtype)
    m = x2.shape[0]

    if tm is None:
        # >= 2 grid steps when possible (keeps both v7x TensorCores busy via the
        # "parallel" axis), capped at 512 rows so the double-buffered x/out
        # tiles plus the VMEM-resident weights stay well under scoped VMEM on
        # v5e / v6e / v7x.
        tm = max(8, min(512, _round_up(-(-m // 2), 8)))
    m_pad = _round_up(m, tm)
    if m_pad != m:
        x2 = jnp.pad(x2, ((0, m_pad - m), (0, 0)))

    w1c = w1.astype(compute_dtype)
    w2c = w2.astype(compute_dtype)
    b1c = b1.reshape(1, h_dim).astype(jnp.float32)
    b2c = b2.reshape(1, d_out).astype(jnp.float32)

    out = pl.pallas_call(
        _mlp_kernel,
        out_shape=jax.ShapeDtypeStruct((m_pad, d_out), orig_dtype),
        grid_spec=pltpu.PrefetchScalarGridSpec(
            num_scalar_prefetch=0,
            grid=(m_pad // tm,),
            in_specs=[
                pl.BlockSpec((tm, d_in), lambda i: (i, 0)),
                pl.BlockSpec((d_in, h_dim), lambda i: (0, 0)),
                pl.BlockSpec((1, h_dim), lambda i: (0, 0)),
                pl.BlockSpec((h_dim, d_out), lambda i: (0, 0)),
                pl.BlockSpec((1, d_out), lambda i: (0, 0)),
            ],
            out_specs=pl.BlockSpec((tm, d_out), lambda i: (i, 0)),
        ),
        compiler_params=pltpu.CompilerParams(
            dimension_semantics=("parallel",),
            vmem_limit_bytes=vmem_limit_bytes,
        ),
    )(x2, w1c, b1c, w2c, b2c)
    # TODO(synk): add hidden-dim / contraction blocking with a VMEM f32
    # accumulator for models whose weight matrices exceed the scoped VMEM
    # budget (not needed for ViT-scale D<=1280, H<=5120 in bf16).

    return out[:m].reshape(*lead_shape, d_out)


if __name__ == "__main__":
    # Small shapes consistent with the module: tokens [B, S, D], MLP ratio 4.
    B, S, D_in = 2, 8, 32
    hidden = 128
    D_out = D_in

    key = jax.random.PRNGKey(0)
    kx, k1, kb1, k2, kb2 = jax.random.split(key, 5)

    x = jax.random.normal(kx, (B, S, D_in), dtype=jnp.float32)
    # Params stored directly in the [in, out] layout (== PyTorch fc.weight.T,
    # relayout done once at init so no per-call transpose is materialized).
    w1 = jax.random.normal(k1, (D_in, hidden), jnp.float32) / math.sqrt(D_in)
    b1 = jax.random.normal(kb1, (hidden,), jnp.float32) * 0.02
    w2 = jax.random.normal(k2, (hidden, D_out), jnp.float32) / math.sqrt(hidden)
    b2 = jax.random.normal(kb2, (D_out,), jnp.float32) * 0.02

    out = mlp_forward(x, w1, b1, w2, b2)
    out = jax.block_until_ready(out)
    assert out.shape == (B, S, D_out)
    assert out.dtype == x.dtype

    f32 = jnp.float32

    # Reference 1: mirrors the kernel's bf16 quantization points exactly
    # (tight check on the kernel arithmetic).
    xb = x.astype(jnp.bfloat16).astype(f32).reshape(-1, D_in)
    w1b = w1.astype(jnp.bfloat16).astype(f32)
    w2b = w2.astype(jnp.bfloat16).astype(f32)
    h = jnp.dot(xb, w1b) + b1[None, :]
    h = 0.5 * h * (1.0 + jax.scipy.special.erf(h / jnp.sqrt(2.0)))
    h = h.astype(jnp.bfloat16).astype(f32)
    ref_mirror = (jnp.dot(h, w2b) + b2[None, :]).reshape(B, S, D_out)
    err_tight = float(jnp.max(jnp.abs(out - ref_mirror)))
    assert jnp.allclose(out, ref_mirror, atol=5e-3, rtol=5e-3), err_tight

    # Reference 2: pure-f32 exact-GELU MLP (the PyTorch forward semantics);
    # remaining differences are only bf16 rounding of the MXU operands.
    hf = jnp.dot(x.reshape(-1, D_in), w1) + b1[None, :]
    hf = 0.5 * hf * (1.0 + jax.scipy.special.erf(hf / jnp.sqrt(2.0)))
    ref_exact = (jnp.dot(hf, w2) + b2[None, :]).reshape(B, S, D_out)
    err_loose = float(jnp.max(jnp.abs(out - ref_exact)))
    assert jnp.allclose(out, ref_exact, atol=1e-1, rtol=1e-1), err_loose

    print("KERNEL_OK")
</pallas_src>

<mosaic_0001>
module attributes {stable_mosaic.version = 11 : i64} {
  func.func @_mlp_kernel(%arg0: i32, %arg1: memref<8x32xbf16, #tpu.memory_space<vmem>>, %arg2: memref<32x128xbf16, #tpu.memory_space<vmem>>, %arg3: memref<1x128xf32, #tpu.memory_space<vmem>>, %arg4: memref<128x32xbf16, #tpu.memory_space<vmem>>, %arg5: memref<1x32xf32, #tpu.memory_space<vmem>>, %arg6: memref<8x32xf32, #tpu.memory_space<vmem>>) attributes {dimension_semantics = [#tpu.dimension_semantics<parallel>], iteration_bounds = array<i64: 2>, scalar_prefetch = 0 : i64, scratch_operands = 0 : i64, tpu.core_type = #tpu.core_type<tc>, window_params = [{transform_indices = @transform_0, window_bounds = array<i64: 8, 32>}, {pipeline_mode = #tpu.pipeline_mode<synchronous>, transform_indices = @transform_1, window_bounds = array<i64: 32, 128>}, {pipeline_mode = #tpu.pipeline_mode<synchronous>, transform_indices = @transform_2, window_bounds = array<i64: 1, 128>}, {pipeline_mode = #tpu.pipeline_mode<synchronous>, transform_indices = @transform_3, window_bounds = array<i64: 128, 32>}, {pipeline_mode = #tpu.pipeline_mode<synchronous>, transform_indices = @transform_4, window_bounds = array<i64: 1, 32>}, {transform_indices = @transform_5, window_bounds = array<i64: 8, 32>}]} {
    %c0 = arith.constant 0 : index
    %c0_0 = arith.constant 0 : index
    %0 = vector.load %arg1[%c0, %c0_0] : memref<8x32xbf16, #tpu.memory_space<vmem>>, vector<8x32xbf16>
    %c0_1 = arith.constant 0 : index
    %c0_2 = arith.constant 0 : index
    %1 = vector.load %arg2[%c0_1, %c0_2] : memref<32x128xbf16, #tpu.memory_space<vmem>>, vector<32x128xbf16>
    %cst = arith.constant dense<0.000000e+00> : vector<8x128xf32>
    %2 = tpu.matmul %0, %1, %cst {dimension_numbers = #tpu.dot_dimension_numbers<[1], [0], [0], [1], [0, 0, 1, 1], [], []>} : vector<8x32xbf16>, vector<32x128xbf16>, vector<8x128xf32> -> vector<8x128xf32>
    %c0_3 = arith.constant 0 : index
    %c0_4 = arith.constant 0 : index
    %3 = vector.load %arg3[%c0_3, %c0_4] : memref<1x128xf32, #tpu.memory_space<vmem>>, vector<1x128xf32>
    %4 = vector.broadcast %3 : vector<1x128xf32> to vector<8x128xf32>
    %5 = arith.addf %2, %4 : vector<8x128xf32>
    %cst_5 = arith.constant 5.000000e-01 : f32
    %6 = vector.broadcast %cst_5 : f32 to vector<8x128xf32>
    %7 = arith.mulf %6, %5 : vector<8x128xf32>
    %cst_6 = arith.constant 0.707106769 : f32
    %8 = vector.broadcast %cst_6 : f32 to vector<8x128xf32>
    %9 = arith.mulf %5, %8 : vector<8x128xf32>
    %cst_7 = arith.constant 0.000000e+00 : f32
    %10 = vector.broadcast %cst_7 : f32 to vector<8x128xf32>
    %11 = arith.cmpf olt, %9, %10 : vector<8x128xf32>
    %cst_8 = arith.constant -1.000000e+00 : f32
    %cst_9 = arith.constant 1.000000e+00 : f32
    %12 = vector.broadcast %cst_8 : f32 to vector<8x128xf32>
    %13 = vector.broadcast %cst_9 : f32 to vector<8x128xf32>
    %14 = arith.select %11, %12, %13 : vector<8x128xi1>, vector<8x128xf32>
    %15 = math.absf %9 : vector<8x128xf32>
    %cst_10 = arith.constant 0.327591091 : f32
    %16 = vector.broadcast %cst_10 : f32 to vector<8x128xf32>
    %17 = arith.mulf %16, %15 : vector<8x128xf32>
    %cst_11 = arith.constant 1.000000e+00 : f32
    %18 = vector.broadcast %cst_11 : f32 to vector<8x128xf32>
    %19 = arith.addf %18, %17 : vector<8x128xf32>
    %cst_12 = arith.constant 1.000000e+00 : f32
    %20 = vector.broadcast %cst_12 : f32 to vector<8x128xf32>
    %21 = arith.divf %20, %19 : vector<8x128xf32>
    %cst_13 = arith.constant 1.06140542 : f32
    %22 = vector.broadcast %cst_13 : f32 to vector<8x128xf32>
    %23 = arith.mulf %21, %22 : vector<8x128xf32>
    %cst_14 = arith.constant -1.45315206 : f32
    %24 = vector.broadcast %cst_14 : f32 to vector<8x128xf32>
    %25 = arith.addf %24, %23 : vector<8x128xf32>
    %26 = arith.mulf %21, %25 : vector<8x128xf32>
    %cst_15 = arith.constant 1.42141378 : f32
    %27 = vector.broadcast %cst_15 : f32 to vector<8x128xf32>
    %28 = arith.addf %27, %26 : vector<8x128xf32>
    %29 = arith.mulf %21, %28 : vector<8x128xf32>
    %cst_16 = arith.constant -0.284496725 : f32
    %30 = vector.broadcast %cst_16 : f32 to vector<8x128xf32>
    %31 = arith.addf %30, %29 : vector<8x128xf32>
    %32 = arith.mulf %21, %31 : vector<8x128xf32>
    %cst_17 = arith.constant 0.254829586 : f32
    %33 = vector.broadcast %cst_17 : f32 to vector<8x128xf32>
    %34 = arith.addf %33, %32 : vector<8x128xf32>
    %35 = arith.mulf %21, %34 : vector<8x128xf32>
    %36 = arith.mulf %15, %15 : vector<8x128xf32>
    %cst_18 = arith.constant 0.000000e+00 : f32
    %37 = vector.broadcast %cst_18 : f32 to vector<8x128xf32>
    %38 = arith.subf %37, %36 : vector<8x128xf32>
    %39 = math.exp %38 : vector<8x128xf32>
    %40 = arith.mulf %35, %39 : vector<8x128xf32>
    %cst_19 = arith.constant 1.000000e+00 : f32
    %41 = vector.broadcast %cst_19 : f32 to vector<8x128xf32>
    %42 = arith.subf %41, %40 : vector<8x128xf32>
    %43 = arith.mulf %14, %42 : vector<8x128xf32>
    %cst_20 = arith.constant 1.000000e+00 : f32
    %44 = vector.broadcast %cst_20 : f32 to vector<8x128xf32>
    %45 = arith.addf %44, %43 : vector<8x128xf32>
    %46 = arith.mulf %7, %45 : vector<8x128xf32>
    %47 = arith.truncf %46 : vector<8x128xf32> to vector<8x128xbf16>
    %c0_21 = arith.constant 0 : index
    %c0_22 = arith.constant 0 : index
    %48 = vector.load %arg4[%c0_21, %c0_22] : memref<128x32xbf16, #tpu.memory_space<vmem>>, vector<128x32xbf16>
    %cst_23 = arith.constant dense<0.000000e+00> : vector<8x32xf32>
    %49 = tpu.matmul %47, %48, %cst_23 {dimension_numbers = #tpu.dot_dimension_numbers<[1], [0], [0], [1], [0, 0, 1, 1], [], []>} : vector<8x128xbf16>, vector<128x32xbf16>, vector<8x32xf32> -> vector<8x32xf32>
    %c0_24 = arith.constant 0 : index
    %c0_25 = arith.constant 0 : index
    %50 = vector.load %arg5[%c0_24, %c0_25] : memref<1x32xf32, #tpu.memory_space<vmem>>, vector<1x32xf32>
    %51 = vector.broadcast %50 : vector<1x32xf32> to vector<8x32xf32>
    %52 = arith.addf %49, %51 : vector<8x32xf32>
    %c0_26 = arith.constant 0 : index
    %c0_27 = arith.constant 0 : index
    %53 = vector.load %arg6[%c0_26, %c0_27] : memref<8x32xf32, #tpu.memory_space<vmem>>, vector<8x32xf32>
    tpu.vector_store %arg6[%c0_26, %c0_27], %52 {strides = array<i32>} : memref<8x32xf32, #tpu.memory_space<vmem>>, vector<8x32xf32>,
    return
  }
  func.func @transform_0(%arg0: i32) -> (i32, i32) {
    %c0_i32 = arith.constant 0 : i32
    %c0_i32_0 = arith.constant 0 : i32
    return %arg0, %c0_i32 : i32, i32
  }
  func.func @transform_1(%arg0: i32) -> (i32, i32) {
    %c0_i32 = arith.constant 0 : i32
    %c0_i32_0 = arith.constant 0 : i32
    %c0_i32_1 = arith.constant 0 : i32
    return %c0_i32, %c0_i32_0 : i32, i32
  }
  func.func @transform_2(%arg0: i32) -> (i32, i32) {
    %c0_i32 = arith.constant 0 : i32
    %c0_i32_0 = arith.constant 0 : i32
    %c0_i32_1 = arith.constant 0 : i32
    return %c0_i32, %c0_i32_0 : i32, i32
  }
  func.func @transform_3(%arg0: i32) -> (i32, i32) {
    %c0_i32 = arith.constant 0 : i32
    %c0_i32_0 = arith.constant 0 : i32
    %c0_i32_1 = arith.constant 0 : i32
    return %c0_i32, %c0_i32_0 : i32, i32
  }
  func.func @transform_4(%arg0: i32) -> (i32, i32) {
    %c0_i32 = arith.constant 0 : i32
    %c0_i32_0 = arith.constant 0 : i32
    %c0_i32_1 = arith.constant 0 : i32
    return %c0_i32, %c0_i32_0 : i32, i32
  }
  func.func @transform_5(%arg0: i32) -> (i32, i32) {
    %c0_i32 = arith.constant 0 : i32
    %c0_i32_0 = arith.constant 0 : i32
    return %arg0, %c0_i32 : i32, i32
  }
}

</mosaic_0001>

<bundles_post_ra>
// kernel: tpu_custom_call.1
= control target key start
LH: loop header
LB: loop body
LE: loop exit
PB: predicated region body
PF: predicated region fallthrough
CT: control target
= control target key end

     0   :  { %10 = vsyncpa [#allocation3], 0  ;;  %s782_s0 = inlined_call_operand.vmem [shape: bf16[16,32], index: 0, kind: input, shape index: {}]   ;;  %s783_s1 = inlined_call_operand.vmem [shape: bf16[32,128], index: 1, kind: input, shape index: {}]   ;;  %s784_s2 = inlined_call_operand.vmem [shape: f32[1,128], index: 2, kind: input, shape index: {}]   ;;  %s785_s3 = inlined_call_operand.vmem [shape: bf16[128,32], index: 3, kind: input, shape index: {}]   ;;  %s786_s4 = inlined_call_operand.vmem [shape: f32[1,32], index: 4, kind: input, shape index: {}]   ;;  %s787_s5 = inlined_call_operand.hbm [shape: f32[16,32], index: 5, kind: output, shape index: {}]  }
   0x1   :  { %12 = vsyncpa [#allocation3 + $0x1], 0  ;;  %s659_s18 = smov 0   ;;  %s661_s19 = smov 0  }
   0x2   :  { %s663_s20 = smov 0   ;;  %s665_s21 = smov 0  }
   0x3 LB: > { %s680_s22 = sadd.s32 4294967295, %s626_s21   ;;  %s457_s23 = sadd.s32 4294967294, %s626_s21   ;;  %s626_s21 = sphi %s665_s21, %s793_s21   ;;  %s622_s20 = sphi %s663_s20, %s792_s20   ;;  %s618_s19 = sphi %s661_s19, %s791_s19   ;;  %s614_s18 = sphi %s659_s18, %s790_s18  }
   0x4   : > { %s684_s24 = sadd.s32 1, %s626_s21   ;;  %s135_s25 = sadd.s32 1, %s622_s20 }
   0x5   : > { %s132_s26 = ssub.s32 %s626_s21, %s684_s24  ;;  %p145_p0 = scmp.ne.s32.totalorder %s622_s20, %s618_s19 }
   0x6   : > { %p133_p1 = scmp.eq.s32.totalorder %s132_s26, 0  ;;  %p146_p2 = scmp.eq.s32.totalorder %s680_s22, 1 }
   0x7   : > { %p151_p3 = scmp.ne.s32.totalorder %s618_s19, %s614_s18  ;;  %p152_p4 = scmp.eq.s32.totalorder %s457_s23, 1 }
   0x8   : > { %s695_s27 = scalar_select %p133_p1, %s622_s20, %s135_s25  }
   0x9   : > { %p697_p5 = por %p146_p2, %p145_p0  ;;  %p701_p6 = por %p152_p4, %p151_p3 }
   0xa   : > { %p460_p7 = scmp.ge.s32.totalorder %s626_s21, 1  ;;  %p189_p8 = scmp.lt.s32.totalorder %s626_s21, 3 }
   0xc   : > { %p190_p9 = pnand %p460_p7, %p189_p8 }
   0xd   : > { %p216_p10 = scmp.lt.s32.totalorder (!%p190_p9), %s680_s22, 1  ;;  %s213_s16 = sand.u32 (!%p190_p9), 1, %s618_s19  }
   0xe   : > { %193 = sbr.rel (%p190_p9) target bundleno = 344 (0x158), region = 40  ;;  %s505_s17 = sshll.u32 (!%p190_p9), %s680_s22, 3 }
   0xf   : > { %s461_s23 = sshll.u32 (!%p190_p9), %s213_s16, 3  ;;  %s393_s30 = scalar_lea.hbm (!%p190_p9), %s787_s5, %s505_s17 }
  0x10   : > { %s215_s8 = scalar_lea.vmem (!%p190_p9), [#allocation2], %s461_s23  ;;  %s584_s15 = scalar_lea.hbm (!%p190_p9), %s787_s5, 16 }
  0x13   : > { %v509_v0 = vld [vmem:[%s783_s1 + $0x8] sm:$0xff]  ;;  %v508_v1 = vld [vmem:[%s783_s1] sm:$0xff]  ;;  %s217_s9 = scalar_select %p216_p10, %s680_s22, 1  ;;  %vm242_vm0 = vcmask 261120   ;;  %v517_v3 = vld [vmem:[%s785_s3 + $0x38] sm:$0xff]  ;;  %v628_v44 = vmov 1.0  }
  0x14   : > { %252 = vmatpush.bf16.msra.mxu0 %v509_v0  ;;  %368 = vmatpush.bf16.msra.mxu1 %v517_v3  ;;  %v516_v4 = vld [vmem:[%s785_s3 + $0x30] sm:$0xff]  ;;  %v515_v5 = vld [vmem:[%s785_s3 + $0x28] sm:$0xff]  ;;  %v558_v6 = vld [vmem:[%s784_s2] ss:$0 sm:$0xff]  ;;  %s383_s22 = scalar_lea.sflag [#allocation3], %s213_s16 }
  0x15   : > { %s462_s10 = sshll.u32 %s217_s9, 2  ;;  %v514_v8 = vld [vmem:[%s785_s3 + $0x20] sm:$0xff]  ;;  %v513_v11 = vld [vmem:[%s785_s3 + $0x18] sm:$0xff]  ;;  %v512_v15 = vld [vmem:[%s785_s3 + $0x10] sm:$0xff]  ;;  %s395_s9 = sshll.u32 %s215_s8, 4  ;;  %s396_s9 = int_to_ptr.vmem [resolvable:$true] %s395_s9 }
  0x16   : > { %s219_s13 = scalar_lea.vmem %s782_s0, %s462_s10  ;;  %v511_v17 = vld [vmem:[%s785_s3 + $0x8] sm:$0xff]  ;;  %v510_v18 = vld [vmem:[%s785_s3] sm:$0xff]  ;;  %s397_s10 = sshll.u32 %s393_s30, 4  ;;  %s398_s10 = int_to_ptr.hbm [resolvable:$true] %s397_s10 }
  0x17   : > { %v221_v2 = vld [vmem:[%s219_s13] sm:$0xf]  ;;  %s578_s11 = sshra.s32 %s398_s10, 4  ;;  %s579_s11 = int_to_ptr.hbm [resolvable:$true] %s578_s11 }
  0x18   : > { %253 = vmatpush.bf16.msra.mxu0 %v508_v1  ;;  %369 = vmatpush.bf16.msra.mxu1 %v516_v4  ;;  %v559_v51 = vld [vmem:[%s786_s4] ss:$0 sm:$0xff]  ;;  %s580_s12 = scalar_lea.hbm %s579_s11, 8  ;;  %p585_p0 = scmp.lt.s32.totalorder %s579_s11, %s787_s5 }
  0x19   : > { %p581_p11 = scmp.ne.s32.totalorder %s579_s11, %s580_s12  ;;  %p586_p1 = scmp.lt.s32.totalorder %s584_s15, %s580_s12 }
  0x1b   : > { %471 = vmatmul.msk.bf16.vlgmr.msra.gmra.mxu0 %vm242_vm0, %v221_v2  ;;  %p582_p12 = pnand %p581_p11, %p697_p5  ;;  %p587_p2 = por %p586_p1, %p585_p0 }
  0x1c   : > { %370 = vmatpush.bf16.msra.mxu1 %v515_v5 }
  0x1d   : > { %p583_p13 = pneg %p582_p12 }
  0x1f   : > { %p588_p3 = pnand %p587_p2, %p583_p13 }
  0x20   : > { %371 = vmatpush.bf16.msra.mxu1 %v514_v8 }
  0x24   : > { %372 = vmatpush.bf16.msra.mxu1 %v513_v11 }
  0x28   : > { %373 = vmatpush.bf16.msra.mxu1 %v512_v15 }
  0x2c   : > { %374 = vmatpush.bf16.msra.mxu1 %v511_v17 }
  0x30   : > { %375 = vmatpush.bf16.msra.mxu1 %v510_v18 }
  0x98   : > { %v255_v7 = vpop.f32.mrf.mxu0 }
  0x99   : > { %v256_v9 = vadd.f32 %v558_v6, %v255_v7 }
  0x9b   : > { %v260_v10 = vmul.f32 0.70710677, %v256_v9  ;;  %v259_v47 = vmul.f32 0.5, %v256_v9 }
  0x9d   : > { %v263_v12 = vand.u32 2147483647, %v260_v10  ;;  %vm261_vm5 = vcmp.lt.f32.partialorder %v260_v10, 0.0 }
  0x9e   : > { %v262_v45 = vsel %vm261_vm5, -1.0, %v628_v44 }
  0x9f   : > { %v264_v13 = vmul.f32 0.3275911, %v263_v12  ;;  %v290_v28 = vmul.f32 %v263_v12, %v263_v12 }
  0xa0   : > { %v257_v14 = vpop.f32.mrf.mxu0 }
  0xa1   : > { %v265_v16 = vadd.f32 1.0, %v264_v13  ;;  %v291_v32 = vsub.f32 0.0, %v290_v28 }
  0xa3   : > { %560 = vrcp.f32 %v265_v16  ;;  %v277_v22 = vand.u32 2147483648, %v265_v16  ;;  %v275_v24 = vand.u32 2147483647, %v265_v16  ;;  %vm271_vm2 = vweird.f32 %v265_v16 }
  0xa4   : > { %v292_v35 = vmul.f32 1.442695, %v291_v32 }
  0xa5   : > { %v278_v26 = vor.u32 1.1754944e-38, %v277_v22  ;;  %vm276_vm4 = vcmp.eq.f32.partialorder %v275_v24, 8.507059e+37 }
  0xa6   : > { %562 = vpow2.f32 %v292_v35 }
  0xa9   : > { %v561_v19 = vpop.eup %560 }
  0xaa   : > { %v267_v20 = vmul.f32 %v561_v19, %v265_v16  ;;  %vm272_vm1 = vweird.f32 %v561_v19 }
  0xab   : > { %vm273_vm3 = vmor %vm271_vm2, %vm272_vm1 }
  0xac   : > { %v268_v21 = vsub.f32 1.0, %v267_v20  ;;  %v563_v41 = vpop.eup %562 }
  0xae   : > { %v269_v23 = vmul.f32 %v561_v19, %v268_v21 }
  0xb0   : > { %v270_v25 = vadd.f32 %v561_v19, %v269_v23 }
  0xb2   : > { %v274_v27 = vsel %vm273_vm3, %v561_v19, %v270_v25 }
  0xb3   : > { %v279_v29 = vsel %vm276_vm4, %v278_v26, %v274_v27 }
  0xb4   : > { %v281_v30 = vmul.f32 1.0614054, %v279_v29 }
  0xb6   : > { %v282_v31 = vadd.f32 -1.4531521, %v281_v30 }
  0xb8   : > { %v283_v33 = vmul.f32 %v282_v31, %v279_v29 }
  0xba   : > { %v284_v34 = vadd.f32 1.4214138, %v283_v33 }
  0xbc   : > { %v285_v36 = vmul.f32 %v284_v34, %v279_v29 }
  0xbe   : > { %v286_v37 = vadd.f32 -0.28449672, %v285_v36 }
  0xc0   : > { %v287_v38 = vmul.f32 %v286_v37, %v279_v29 }
  0xc2   : > { %v288_v39 = vadd.f32 0.2548296, %v287_v38 }
  0xc4   : > { %v289_v40 = vmul.f32 %v288_v39, %v279_v29 }
  0xc6   : > { %v294_v42 = vmul.f32 %v563_v41, %v289_v40 }
  0xc8   : > { %v295_v43 = vsub.f32 1.0, %v294_v42 }
  0xca   : > { %v296_v46 = vmul.f32 %v295_v43, %v262_v45 }
  0xcc   : > { %v297_v48 = vadd.f32 1.0, %v296_v46 }
  0xce   : > { %v298_v49 = vmul.f32 %v297_v48, %v259_v47 }
  0xd0   : > { %v299_v50 = vpack.c.bf16 %v298_v49, %v298_v49 }
  0xd2   : > { %376 = vmatmul.bf16.vlgmr.msra.gmra.mxu1 %v299_v50 }
 0x14f   : > { %v377_v52 = vpop.f32.mrf.mxu1 }
 0x150   : > { %v378_v53 = vadd.f32 %v559_v51, %v377_v52 }
 0x152   : > { %381 = vst.msk [vmem:[%s215_s8] sm:$0xff] %vm242_vm0, %v378_v53 }
 0x153   : > { %591 = shalt.err (!%p588_p3)
}
 0x154   : > { %518 = dma.vmem_to_hbm [thread:$0]  (%p697_p5), %s396_s9, 128, %s398_s10, %s383_s22  }
 0x157   : > { %v379_v54 = vpop.f32.mrf.mxu1 }
 0x158 PF: > { %p524_p4 = scmp.ge.s32.totalorder %s626_s21, 2  ;;  %s409_s16 = sand.u32 1, %s614_s18  }
 0x159   : > { %s410_s25 = scalar_lea.sflag [#allocation3], %s409_s16 }
 0x15a   : > { %p521_p7 = pnand %p524_p4, %p701_p6 }
 0x15c   : > { %p522_p8 = pneg %p521_p7 }
 0x15e   : > { %609 = dma.done.wait (%p522_p8), %s410_s25, 128  }
 0x15f   : > { %611 = vsyncadd (%p522_p8), %s410_s25, 4294967168  ;;  %p15_p9 = scmp.ge.s32.totalorder %s684_s24, 4   ;;  %s790_s18 = smov %s618_s19 }
 0x160   : > { %s791_s19 = smov %s622_s20  ;;  %s792_s20 = smov %s695_s27 }
 0x161   : > { %s793_s21 = smov %s684_s24  ;;  %17 = sbr.rel (!%p15_p9) target bundleno = 3 (0x3), region = 75 }
 0x166   :  { %416 = vsyncpa [#allocation3], 1 }
 0x167   :  { %418 = vsyncpa [#allocation3 + $0x1], 1 }

</bundles_post_ra>
